<compile_context>
chip_gen: v6e
topology: v6e:2x2x1
jax: 0.10.0
libtpu: 0.0.40
codegen_flags: <defaults>
</compile_context>

<pallas_src>
import numpy as np
import jax
import jax.numpy as jnp
from jax import lax
from jax.experimental import pallas as pl
from jax.experimental.pallas import tpu as pltpu

HIDDEN = 10
INPUT = 42
GATES = 4 * HIDDEN            # fused gate dim, kernel-internal order [i, f, o, g]


def _lstm_fc_kernel(x_ref, wih_ref, whh_ref, b_ref, fcw_ref, fcb_ref,
                    out_ref, xp_sc):
    """Whole-sequence LSTM recurrence + final Linear + Sigmoid, fully in VMEM."""
    seq = x_ref.shape[0]

    # Sequence-wide input projection: one MXU-friendly matmul instead of one
    # tiny matmul per timestep.  XP[t] = x_t @ Wih_all + (b_ih + b_hh).
    xp_sc[...] = (jnp.dot(x_ref[...], wih_ref[...],
                          preferred_element_type=jnp.float32) + b_ref[...])

    # Recurrent weight loaded once, held in vregs across the whole loop.
    whh = whh_ref[...]                          # (HIDDEN, 4*HIDDEN)

    def step(t, carry):
        h, c = carry                            # (1, HIDDEN) each, live in vregs
        gates = (xp_sc[pl.ds(t, 1), :] +
                 jnp.dot(h, whh, preferred_element_type=jnp.float32))   # (1, 40)
        sig = jax.nn.sigmoid(gates)             # i, f, o live in lanes 0:3H
        g = jnp.tanh(gates[:, 3 * HIDDEN:GATES])
        i = sig[:, 0:HIDDEN]
        f = sig[:, HIDDEN:2 * HIDDEN]
        o = sig[:, 2 * HIDDEN:3 * HIDDEN]
        c_new = f * c + i * g
        h_new = o * jnp.tanh(c_new)
        return (h_new, c_new)

    # h0 = c0 = 0 (matches torch.zeros(1, 1, 10) in the reference forward)
    h0 = jnp.zeros((1, HIDDEN), jnp.float32)
    c0 = jnp.zeros((1, HIDDEN), jnp.float32)

    if seq <= 64:
        # Fully unroll the (latency-bound) serial recurrence: next step's XP
        # load / bias add can hide under the current step's EUP/VPU tail.
        carry = (h0, c0)
        for t in range(seq):
            carry = step(t, carry)
        h, _ = carry
    else:
        h, _ = lax.fori_loop(0, seq, step, (h0, c0), unroll=8)

    # fc(out[-1][-1]) -> sigmoid : last-timestep hidden of the (single) batch elt.
    logits = (jnp.dot(h, fcw_ref[...], preferred_element_type=jnp.float32)
              + fcb_ref[...])                   # (1, 1)
    out_ref[...] = jax.nn.sigmoid(logits)


def dynamic_predict_forward(x, w_ih, w_hh, b_ih, b_hh, fc_w, fc_b):
    """x: (1, seq, 42) float32 (batch_first; batch must be 1 like the PyTorch module)."""
    assert x.shape[0] == 1 and x.shape[2] == INPUT
    x2d = x[0]                                                  # (seq, 42)
    seq = x2d.shape[0]

    # Fuse + reorder gates: PyTorch stacks [i, f, g, o]; the kernel wants
    # [i, f, o, g] so the sigmoid block (i, f, o) is contiguous in lanes 0:3H.
    order = (0, 1, 3, 2)
    w_ih4 = w_ih.reshape(4, HIDDEN, INPUT)
    w_hh4 = w_hh.reshape(4, HIDDEN, HIDDEN)
    b4 = (b_ih + b_hh).reshape(4, HIDDEN)
    wih_all = jnp.concatenate([w_ih4[k].T for k in order], axis=1)   # (42, 40)
    whh_all = jnp.concatenate([w_hh4[k].T for k in order], axis=1)   # (10, 40)
    b_all = jnp.concatenate([b4[k] for k in order]).reshape(1, GATES)  # (1, 40)
    fcw = fc_w.T                                                     # (10, 1)
    fcb = fc_b.reshape(1, 1)                                         # (1, 1)

    # TODO(synk): for very long sequences, stream x/XP in seq-chunks (grid axis
    # marked "arbitrary") instead of whole-sequence VMEM residency (v7x: 64 MiB).
    vmem_spec = pl.BlockSpec(memory_space=pltpu.MemorySpace.VMEM)
    out = pl.pallas_call(
        _lstm_fc_kernel,
        out_shape=jax.ShapeDtypeStruct((1, 1), jnp.float32),
        in_specs=[vmem_spec] * 6,
        out_specs=vmem_spec,
        scratch_shapes=[pltpu.VMEM((seq, GATES), jnp.float32)],   # hoisted XP
    )(x2d, wih_all, whh_all, b_all, fcw, fcb)
    return out[0]                                                # shape (1,) like PyTorch


def _ref_forward(x, w_ih, w_hh, b_ih, b_hh, fc_w, fc_b):
    """Pure-JAX reference of the PyTorch forward (for correctness check)."""
    x2d = x[0]

    def step(carry, x_t):
        h, c = carry
        gates = x_t @ w_ih.T + b_ih + h @ w_hh.T + b_hh
        i = jax.nn.sigmoid(gates[0:HIDDEN])
        f = jax.nn.sigmoid(gates[HIDDEN:2 * HIDDEN])
        g = jnp.tanh(gates[2 * HIDDEN:3 * HIDDEN])
        o = jax.nn.sigmoid(gates[3 * HIDDEN:4 * HIDDEN])
        c = f * c + i * g
        h = o * jnp.tanh(c)
        return (h, c), None

    (h, _), _ = lax.scan(step, (jnp.zeros(HIDDEN), jnp.zeros(HIDDEN)), x2d)
    return jax.nn.sigmoid(h @ fc_w.T + fc_b)


if __name__ == "__main__":
    key = jax.random.PRNGKey(0)
    ks = jax.random.split(key, 7)

    seq = 8
    x = jax.random.normal(ks[0], (1, seq, INPUT), dtype=jnp.float32)

    # Deterministic parameter init, matching PyTorch LSTM/Linear uniform(-1/sqrt(H), 1/sqrt(H)).
    bound = 1.0 / np.sqrt(HIDDEN)
    w_ih = jax.random.uniform(ks[1], (4 * HIDDEN, INPUT), jnp.float32, -bound, bound)
    w_hh = jax.random.uniform(ks[2], (4 * HIDDEN, HIDDEN), jnp.float32, -bound, bound)
    b_ih = jax.random.uniform(ks[3], (4 * HIDDEN,), jnp.float32, -bound, bound)
    b_hh = jax.random.uniform(ks[4], (4 * HIDDEN,), jnp.float32, -bound, bound)
    fc_w = jax.random.uniform(ks[5], (1, HIDDEN), jnp.float32, -bound, bound)
    fc_b = jax.random.uniform(ks[6], (1,), jnp.float32, -bound, bound)

    out = dynamic_predict_forward(x, w_ih, w_hh, b_ih, b_hh, fc_w, fc_b)
    jax.block_until_ready(out)

    ref = _ref_forward(x, w_ih, w_hh, b_ih, b_hh, fc_w, fc_b)
    np.testing.assert_allclose(np.asarray(out), np.asarray(ref), rtol=1e-4, atol=1e-5)

    print("KERNEL_OK")
</pallas_src>

<mosaic_0001>
module attributes {stable_mosaic.version = 11 : i64} {
  func.func @_lstm_fc_kernel(%arg0: memref<8x42xf32, #tpu.memory_space<vmem>>, %arg1: memref<42x40xf32, #tpu.memory_space<vmem>>, %arg2: memref<10x40xf32, #tpu.memory_space<vmem>>, %arg3: memref<1x40xf32, #tpu.memory_space<vmem>>, %arg4: memref<10x1xf32, #tpu.memory_space<vmem>>, %arg5: memref<1x1xf32, #tpu.memory_space<vmem>>, %arg6: memref<1x1xf32, #tpu.memory_space<vmem>>, %arg7: memref<8x40xf32, #tpu.memory_space<vmem>>) attributes {dimension_semantics = [], scalar_prefetch = 0 : i64, scratch_operands = 1 : i64, tpu.core_type = #tpu.core_type<tc>} {
    %c0 = arith.constant 0 : index
    %c0_0 = arith.constant 0 : index
    %0 = vector.load %arg0[%c0, %c0_0] : memref<8x42xf32, #tpu.memory_space<vmem>>, vector<8x42xf32>
    %c0_1 = arith.constant 0 : index
    %c0_2 = arith.constant 0 : index
    %1 = vector.load %arg1[%c0_1, %c0_2] : memref<42x40xf32, #tpu.memory_space<vmem>>, vector<42x40xf32>
    %cst = arith.constant dense<0.000000e+00> : vector<8x40xf32>
    %2 = tpu.matmul %0, %1, %cst {dimension_numbers = #tpu.dot_dimension_numbers<[1], [0], [0], [1], [0, 0, 1, 1], [], []>} : vector<8x42xf32>, vector<42x40xf32>, vector<8x40xf32> -> vector<8x40xf32>
    %c0_3 = arith.constant 0 : index
    %c0_4 = arith.constant 0 : index
    %3 = vector.load %arg3[%c0_3, %c0_4] : memref<1x40xf32, #tpu.memory_space<vmem>>, vector<1x40xf32>
    %4 = vector.broadcast %3 : vector<1x40xf32> to vector<8x40xf32>
    %5 = arith.addf %2, %4 : vector<8x40xf32>
    %c0_5 = arith.constant 0 : index
    %c0_6 = arith.constant 0 : index
    %6 = vector.load %arg7[%c0_5, %c0_6] : memref<8x40xf32, #tpu.memory_space<vmem>>, vector<8x40xf32>
    tpu.vector_store %arg7[%c0_5, %c0_6], %5 {strides = array<i32>} : memref<8x40xf32, #tpu.memory_space<vmem>>, vector<8x40xf32>,
    %c0_7 = arith.constant 0 : index
    %c0_8 = arith.constant 0 : index
    %7 = vector.load %arg2[%c0_7, %c0_8] : memref<10x40xf32, #tpu.memory_space<vmem>>, vector<10x40xf32>
    %cst_9 = arith.constant 0.000000e+00 : f32
    %8 = vector.broadcast %cst_9 : f32 to vector<1x10xf32>
    %cst_10 = arith.constant 0.000000e+00 : f32
    %9 = vector.broadcast %cst_10 : f32 to vector<1x10xf32>
    %c0_11 = arith.constant 0 : index
    %c0_12 = arith.constant 0 : index
    %10 = vector.load %arg7[%c0_11, %c0_12] : memref<8x40xf32, #tpu.memory_space<vmem>>, vector<1x40xf32>
    %cst_13 = arith.constant dense<0.000000e+00> : vector<1x40xf32>
    %11 = tpu.matmul %8, %7, %cst_13 {dimension_numbers = #tpu.dot_dimension_numbers<[1], [0], [0], [1], [0, 0, 1, 1], [], []>} : vector<1x10xf32>, vector<10x40xf32>, vector<1x40xf32> -> vector<1x40xf32>
    %12 = arith.addf %10, %11 : vector<1x40xf32>
    %13 = arith.negf %12 : vector<1x40xf32>
    %14 = math.exp %13 : vector<1x40xf32>
    %cst_14 = arith.constant 1.000000e+00 : f32
    %15 = vector.broadcast %cst_14 : f32 to vector<1x40xf32>
    %16 = arith.addf %15, %14 : vector<1x40xf32>
    %17 = arith.divf %15, %16 : vector<1x40xf32>
    %18 = vector.extract_strided_slice %12 {offsets = [0, 30], sizes = [1, 10], strides = [1, 1]} : vector<1x40xf32> to vector<1x10xf32>
    %19 = math.tanh %18 : vector<1x10xf32>
    %20 = vector.extract_strided_slice %17 {offsets = [0, 0], sizes = [1, 10], strides = [1, 1]} : vector<1x40xf32> to vector<1x10xf32>
    %21 = vector.extract_strided_slice %17 {offsets = [0, 10], sizes = [1, 10], strides = [1, 1]} : vector<1x40xf32> to vector<1x10xf32>
    %22 = vector.extract_strided_slice %17 {offsets = [0, 20], sizes = [1, 10], strides = [1, 1]} : vector<1x40xf32> to vector<1x10xf32>
    %23 = arith.mulf %21, %9 : vector<1x10xf32>
    %24 = arith.mulf %20, %19 : vector<1x10xf32>
    %25 = arith.addf %23, %24 : vector<1x10xf32>
    %26 = math.tanh %25 : vector<1x10xf32>
    %27 = arith.mulf %22, %26 : vector<1x10xf32>
    %c1 = arith.constant 1 : index
    %c0_15 = arith.constant 0 : index
    %28 = vector.load %arg7[%c1, %c0_15] : memref<8x40xf32, #tpu.memory_space<vmem>>, vector<1x40xf32>
    %cst_16 = arith.constant dense<0.000000e+00> : vector<1x40xf32>
    %29 = tpu.matmul %27, %7, %cst_16 {dimension_numbers = #tpu.dot_dimension_numbers<[1], [0], [0], [1], [0, 0, 1, 1], [], []>} : vector<1x10xf32>, vector<10x40xf32>, vector<1x40xf32> -> vector<1x40xf32>
    %30 = arith.addf %28, %29 : vector<1x40xf32>
    %31 = arith.negf %30 : vector<1x40xf32>
    %32 = math.exp %31 : vector<1x40xf32>
    %cst_17 = arith.constant 1.000000e+00 : f32
    %33 = vector.broadcast %cst_17 : f32 to vector<1x40xf32>
    %34 = arith.addf %33, %32 : vector<1x40xf32>
    %35 = arith.divf %33, %34 : vector<1x40xf32>
    %36 = vector.extract_strided_slice %30 {offsets = [0, 30], sizes = [1, 10], strides = [1, 1]} : vector<1x40xf32> to vector<1x10xf32>
    %37 = math.tanh %36 : vector<1x10xf32>
    %38 = vector.extract_strided_slice %35 {offsets = [0, 0], sizes = [1, 10], strides = [1, 1]} : vector<1x40xf32> to vector<1x10xf32>
    %39 = vector.extract_strided_slice %35 {offsets = [0, 10], sizes = [1, 10], strides = [1, 1]} : vector<1x40xf32> to vector<1x10xf32>
    %40 = vector.extract_strided_slice %35 {offsets = [0, 20], sizes = [1, 10], strides = [1, 1]} : vector<1x40xf32> to vector<1x10xf32>
    %41 = arith.mulf %39, %25 : vector<1x10xf32>
    %42 = arith.mulf %38, %37 : vector<1x10xf32>
    %43 = arith.addf %41, %42 : vector<1x10xf32>
    %44 = math.tanh %43 : vector<1x10xf32>
    %45 = arith.mulf %40, %44 : vector<1x10xf32>
    %c2 = arith.constant 2 : index
    %c0_18 = arith.constant 0 : index
    %46 = vector.load %arg7[%c2, %c0_18] : memref<8x40xf32, #tpu.memory_space<vmem>>, vector<1x40xf32>
    %cst_19 = arith.constant dense<0.000000e+00> : vector<1x40xf32>
    %47 = tpu.matmul %45, %7, %cst_19 {dimension_numbers = #tpu.dot_dimension_numbers<[1], [0], [0], [1], [0, 0, 1, 1], [], []>} : vector<1x10xf32>, vector<10x40xf32>, vector<1x40xf32> -> vector<1x40xf32>
    %48 = arith.addf %46, %47 : vector<1x40xf32>
    %49 = arith.negf %48 : vector<1x40xf32>
    %50 = math.exp %49 : vector<1x40xf32>
    %cst_20 = arith.constant 1.000000e+00 : f32
    %51 = vector.broadcast %cst_20 : f32 to vector<1x40xf32>
    %52 = arith.addf %51, %50 : vector<1x40xf32>
    %53 = arith.divf %51, %52 : vector<1x40xf32>
    %54 = vector.extract_strided_slice %48 {offsets = [0, 30], sizes = [1, 10], strides = [1, 1]} : vector<1x40xf32> to vector<1x10xf32>
    %55 = math.tanh %54 : vector<1x10xf32>
    %56 = vector.extract_strided_slice %53 {offsets = [0, 0], sizes = [1, 10], strides = [1, 1]} : vector<1x40xf32> to vector<1x10xf32>
    %57 = vector.extract_strided_slice %53 {offsets = [0, 10], sizes = [1, 10], strides = [1, 1]} : vector<1x40xf32> to vector<1x10xf32>
    %58 = vector.extract_strided_slice %53 {offsets = [0, 20], sizes = [1, 10], strides = [1, 1]} : vector<1x40xf32> to vector<1x10xf32>
    %59 = arith.mulf %57, %43 : vector<1x10xf32>
    %60 = arith.mulf %56, %55 : vector<1x10xf32>
    %61 = arith.addf %59, %60 : vector<1x10xf32>
    %62 = math.tanh %61 : vector<1x10xf32>
    %63 = arith.mulf %58, %62 : vector<1x10xf32>
    %c3 = arith.constant 3 : index
    %c0_21 = arith.constant 0 : index
    %64 = vector.load %arg7[%c3, %c0_21] : memref<8x40xf32, #tpu.memory_space<vmem>>, vector<1x40xf32>
    %cst_22 = arith.constant dense<0.000000e+00> : vector<1x40xf32>
    %65 = tpu.matmul %63, %7, %cst_22 {dimension_numbers = #tpu.dot_dimension_numbers<[1], [0], [0], [1], [0, 0, 1, 1], [], []>} : vector<1x10xf32>, vector<10x40xf32>, vector<1x40xf32> -> vector<1x40xf32>
    %66 = arith.addf %64, %65 : vector<1x40xf32>
    %67 = arith.negf %66 : vector<1x40xf32>
    %68 = math.exp %67 : vector<1x40xf32>
    %cst_23 = arith.constant 1.000000e+00 : f32
    %69 = vector.broadcast %cst_23 : f32 to vector<1x40xf32>
    %70 = arith.addf %69, %68 : vector<1x40xf32>
    %71 = arith.divf %69, %70 : vector<1x40xf32>
    %72 = vector.extract_strided_slice %66 {offsets = [0, 30], sizes = [1, 10], strides = [1, 1]} : vector<1x40xf32> to vector<1x10xf32>
    %73 = math.tanh %72 : vector<1x10xf32>
    %74 = vector.extract_strided_slice %71 {offsets = [0, 0], sizes = [1, 10], strides = [1, 1]} : vector<1x40xf32> to vector<1x10xf32>
    %75 = vector.extract_strided_slice %71 {offsets = [0, 10], sizes = [1, 10], strides = [1, 1]} : vector<1x40xf32> to vector<1x10xf32>
    %76 = vector.extract_strided_slice %71 {offsets = [0, 20], sizes = [1, 10], strides = [1, 1]} : vector<1x40xf32> to vector<1x10xf32>
    %77 = arith.mulf %75, %61 : vector<1x10xf32>
    %78 = arith.mulf %74, %73 : vector<1x10xf32>
    %79 = arith.addf %77, %78 : vector<1x10xf32>
    %80 = math.tanh %79 : vector<1x10xf32>
    %81 = arith.mulf %76, %80 : vector<1x10xf32>
    %c4 = arith.constant 4 : index
    %c0_24 = arith.constant 0 : index
    %82 = vector.load %arg7[%c4, %c0_24] : memref<8x40xf32, #tpu.memory_space<vmem>>, vector<1x40xf32>
    %cst_25 = arith.constant dense<0.000000e+00> : vector<1x40xf32>
    %83 = tpu.matmul %81, %7, %cst_25 {dimension_numbers = #tpu.dot_dimension_numbers<[1], [0], [0], [1], [0, 0, 1, 1], [], []>} : vector<1x10xf32>, vector<10x40xf32>, vector<1x40xf32> -> vector<1x40xf32>
    %84 = arith.addf %82, %83 : vector<1x40xf32>
    %85 = arith.negf %84 : vector<1x40xf32>
    %86 = math.exp %85 : vector<1x40xf32>
    %cst_26 = arith.constant 1.000000e+00 : f32
    %87 = vector.broadcast %cst_26 : f32 to vector<1x40xf32>
    %88 = arith.addf %87, %86 : vector<1x40xf32>
    %89 = arith.divf %87, %88 : vector<1x40xf32>
    %90 = vector.extract_strided_slice %84 {offsets = [0, 30], sizes = [1, 10], strides = [1, 1]} : vector<1x40xf32> to vector<1x10xf32>
    %91 = math.tanh %90 : vector<1x10xf32>
    %92 = vector.extract_strided_slice %89 {offsets = [0, 0], sizes = [1, 10], strides = [1, 1]} : vector<1x40xf32> to vector<1x10xf32>
    %93 = vector.extract_strided_slice %89 {offsets = [0, 10], sizes = [1, 10], strides = [1, 1]} : vector<1x40xf32> to vector<1x10xf32>
    %94 = vector.extract_strided_slice %89 {offsets = [0, 20], sizes = [1, 10], strides = [1, 1]} : vector<1x40xf32> to vector<1x10xf32>
    %95 = arith.mulf %93, %79 : vector<1x10xf32>
    %96 = arith.mulf %92, %91 : vector<1x10xf32>
    %97 = arith.addf %95, %96 : vector<1x10xf32>
    %98 = math.tanh %97 : vector<1x10xf32>
    %99 = arith.mulf %94, %98 : vector<1x10xf32>
    %c5 = arith.constant 5 : index
    %c0_27 = arith.constant 0 : index
    %100 = vector.load %arg7[%c5, %c0_27] : memref<8x40xf32, #tpu.memory_space<vmem>>, vector<1x40xf32>
    %cst_28 = arith.constant dense<0.000000e+00> : vector<1x40xf32>
    %101 = tpu.matmul %99, %7, %cst_28 {dimension_numbers = #tpu.dot_dimension_numbers<[1], [0], [0], [1], [0, 0, 1, 1], [], []>} : vector<1x10xf32>, vector<10x40xf32>, vector<1x40xf32> -> vector<1x40xf32>
    %102 = arith.addf %100, %101 : vector<1x40xf32>
    %103 = arith.negf %102 : vector<1x40xf32>
    %104 = math.exp %103 : vector<1x40xf32>
    %cst_29 = arith.constant 1.000000e+00 : f32
    %105 = vector.broadcast %cst_29 : f32 to vector<1x40xf32>
    %106 = arith.addf %105, %104 : vector<1x40xf32>
    %107 = arith.divf %105, %106 : vector<1x40xf32>
    %108 = vector.extract_strided_slice %102 {offsets = [0, 30], sizes = [1, 10], strides = [1, 1]} : vector<1x40xf32> to vector<1x10xf32>
    %109 = math.tanh %108 : vector<1x10xf32>
    %110 = vector.extract_strided_slice %107 {offsets = [0, 0], sizes = [1, 10], strides = [1, 1]} : vector<1x40xf32> to vector<1x10xf32>
    %111 = vector.extract_strided_slice %107 {offsets = [0, 10], sizes = [1, 10], strides = [1, 1]} : vector<1x40xf32> to vector<1x10xf32>
    %112 = vector.extract_strided_slice %107 {offsets = [0, 20], sizes = [1, 10], strides = [1, 1]} : vector<1x40xf32> to vector<1x10xf32>
    %113 = arith.mulf %111, %97 : vector<1x10xf32>
    %114 = arith.mulf %110, %109 : vector<1x10xf32>
    %115 = arith.addf %113, %114 : vector<1x10xf32>
    %116 = math.tanh %115 : vector<1x10xf32>
    %117 = arith.mulf %112, %116 : vector<1x10xf32>
    %c6 = arith.constant 6 : index
    %c0_30 = arith.constant 0 : index
    %118 = vector.load %arg7[%c6, %c0_30] : memref<8x40xf32, #tpu.memory_space<vmem>>, vector<1x40xf32>
    %cst_31 = arith.constant dense<0.000000e+00> : vector<1x40xf32>
    %119 = tpu.matmul %117, %7, %cst_31 {dimension_numbers = #tpu.dot_dimension_numbers<[1], [0], [0], [1], [0, 0, 1, 1], [], []>} : vector<1x10xf32>, vector<10x40xf32>, vector<1x40xf32> -> vector<1x40xf32>
    %120 = arith.addf %118, %119 : vector<1x40xf32>
    %121 = arith.negf %120 : vector<1x40xf32>
    %122 = math.exp %121 : vector<1x40xf32>
    %cst_32 = arith.constant 1.000000e+00 : f32
    %123 = vector.broadcast %cst_32 : f32 to vector<1x40xf32>
    %124 = arith.addf %123, %122 : vector<1x40xf32>
    %125 = arith.divf %123, %124 : vector<1x40xf32>
    %126 = vector.extract_strided_slice %120 {offsets = [0, 30], sizes = [1, 10], strides = [1, 1]} : vector<1x40xf32> to vector<1x10xf32>
    %127 = math.tanh %126 : vector<1x10xf32>
    %128 = vector.extract_strided_slice %125 {offsets = [0, 0], sizes = [1, 10], strides = [1, 1]} : vector<1x40xf32> to vector<1x10xf32>
    %129 = vector.extract_strided_slice %125 {offsets = [0, 10], sizes = [1, 10], strides = [1, 1]} : vector<1x40xf32> to vector<1x10xf32>
    %130 = vector.extract_strided_slice %125 {offsets = [0, 20], sizes = [1, 10], strides = [1, 1]} : vector<1x40xf32> to vector<1x10xf32>
    %131 = arith.mulf %129, %115 : vector<1x10xf32>
    %132 = arith.mulf %128, %127 : vector<1x10xf32>
    %133 = arith.addf %131, %132 : vector<1x10xf32>
    %134 = math.tanh %133 : vector<1x10xf32>
    %135 = arith.mulf %130, %134 : vector<1x10xf32>
    %c7 = arith.constant 7 : index
    %c0_33 = arith.constant 0 : index
    %136 = vector.load %arg7[%c7, %c0_33] : memref<8x40xf32, #tpu.memory_space<vmem>>, vector<1x40xf32>
    %cst_34 = arith.constant dense<0.000000e+00> : vector<1x40xf32>
    %137 = tpu.matmul %135, %7, %cst_34 {dimension_numbers = #tpu.dot_dimension_numbers<[1], [0], [0], [1], [0, 0, 1, 1], [], []>} : vector<1x10xf32>, vector<10x40xf32>, vector<1x40xf32> -> vector<1x40xf32>
    %138 = arith.addf %136, %137 : vector<1x40xf32>
    %139 = arith.negf %138 : vector<1x40xf32>
    %140 = math.exp %139 : vector<1x40xf32>
    %cst_35 = arith.constant 1.000000e+00 : f32
    %141 = vector.broadcast %cst_35 : f32 to vector<1x40xf32>
    %142 = arith.addf %141, %140 : vector<1x40xf32>
    %143 = arith.divf %141, %142 : vector<1x40xf32>
    %144 = vector.extract_strided_slice %138 {offsets = [0, 30], sizes = [1, 10], strides = [1, 1]} : vector<1x40xf32> to vector<1x10xf32>
    %145 = math.tanh %144 : vector<1x10xf32>
    %146 = vector.extract_strided_slice %143 {offsets = [0, 0], sizes = [1, 10], strides = [1, 1]} : vector<1x40xf32> to vector<1x10xf32>
    %147 = vector.extract_strided_slice %143 {offsets = [0, 10], sizes = [1, 10], strides = [1, 1]} : vector<1x40xf32> to vector<1x10xf32>
    %148 = vector.extract_strided_slice %143 {offsets = [0, 20], sizes = [1, 10], strides = [1, 1]} : vector<1x40xf32> to vector<1x10xf32>
    %149 = arith.mulf %147, %133 : vector<1x10xf32>
    %150 = arith.mulf %146, %145 : vector<1x10xf32>
    %151 = arith.addf %149, %150 : vector<1x10xf32>
    %152 = math.tanh %151 : vector<1x10xf32>
    %153 = arith.mulf %148, %152 : vector<1x10xf32>
    %c0_36 = arith.constant 0 : index
    %c0_37 = arith.constant 0 : index
    %154 = vector.load %arg4[%c0_36, %c0_37] : memref<10x1xf32, #tpu.memory_space<vmem>>, vector<10x1xf32>
    %cst_38 = arith.constant dense<0.000000e+00> : vector<1x1xf32>
    %155 = tpu.matmul %153, %154, %cst_38 {dimension_numbers = #tpu.dot_dimension_numbers<[1], [0], [0], [1], [0, 0, 1, 1], [], []>} : vector<1x10xf32>, vector<10x1xf32>, vector<1x1xf32> -> vector<1x1xf32>
    %c0_39 = arith.constant 0 : index
    %c0_40 = arith.constant 0 : index
    %156 = vector.load %arg5[%c0_39, %c0_40] : memref<1x1xf32, #tpu.memory_space<vmem>>, vector<1x1xf32>
    %157 = arith.addf %155, %156 : vector<1x1xf32>
    %158 = arith.negf %157 : vector<1x1xf32>
    %159 = math.exp %158 : vector<1x1xf32>
    %cst_41 = arith.constant 1.000000e+00 : f32
    %160 = vector.broadcast %cst_41 : f32 to vector<1x1xf32>
    %161 = arith.addf %160, %159 : vector<1x1xf32>
    %162 = arith.divf %160, %161 : vector<1x1xf32>
    %c0_42 = arith.constant 0 : index
    %c0_43 = arith.constant 0 : index
    %163 = vector.load %arg6[%c0_42, %c0_43] : memref<1x1xf32, #tpu.memory_space<vmem>>, vector<1x1xf32>
    tpu.vector_store %arg6[%c0_42, %c0_43], %162 {strides = array<i32>} : memref<1x1xf32, #tpu.memory_space<vmem>>, vector<1x1xf32>,
    return
  }
}

</mosaic_0001>

<bundles_post_ra>
// kernel: tpu_custom_call.1
= control target key start
LH: loop header
LB: loop body
LE: loop exit
PB: predicated region body
PF: predicated region fallthrough
CT: control target
= control target key end

     0   :  { %s1470_s0 = inlined_call_operand.vmem [shape: f32[8,42], index: 0, kind: input, shape index: {}]   ;;  %s1471_s1 = inlined_call_operand.vmem [shape: f32[42,40], index: 1, kind: input, shape index: {}]   ;;  %s1472_s2 = inlined_call_operand.vmem [shape: f32[10,40], index: 2, kind: input, shape index: {}]   ;;  %s1473_s3 = inlined_call_operand.vmem [shape: f32[1,40], index: 3, kind: input, shape index: {}]   ;;  %s1474_s4 = inlined_call_operand.vmem [shape: f32[10,1], index: 4, kind: input, shape index: {}]   ;;  %s1475_s5 = inlined_call_operand.<no memory space> [shape: f32[1,1], index: 5, kind: input, shape index: {}]   ;;  %s1476_s6 = inlined_call_operand.hbm [shape: f32[1,1], index: 6, kind: output, shape index: {}]  }
   0x1   :  { %v11_v0 = vstv %s1475_s5 }
   0x2   :  { %12 = vst [vmem:[#allocation3] sm:$0x1] %v11_v0 }
   0x3   :  { %v32_v1 = vld [vmem:[%s1471_s1 + $0x28] sm:$0x3]  ;;  %vm44_vm0 = vcmask 1041408   ;;  %v1272_v2 = vmov 0.0   ;;  %v31_v3 = vld [vmem:[%s1471_s1 + $0x20] sm:$0xff]  ;;  %vm1273_vm1 = vmmov 0  }
   0x4   :  { %1098 = vmatprep.subr.mxu0 %v1272_v2  ;;  %1113 = vmatprep.subr.mxu1 %v1272_v2  ;;  %v1330_v4 = vld [vmem:[%s1472_s2 + $0x8] sm:$0x3]  ;;  %v1335_v5 = vld [vmem:[%s1472_s2] sm:$0xff]  ;;  %v30_v6 = vld [vmem:[%s1471_s1 + $0x18] sm:$0xff] }
   0x5   :  { %1099 = vmatpush3.msk.msra.mxu0 %vm44_vm0, %v32_v1  ;;  %1110 = vmatprep.mubr.msk.f32.mxu0 %vm1273_vm1, %v1272_v2 }
   0x6   :  { %1100 = vmatprep.subr.mxu0 %v1272_v2  ;;  %1114 = vmatpush3.msk.msra.mxu1 %vm44_vm0, %v1330_v4 }
   0x7   :  { %13 = vsyncpa [#allocation5], 0  ;;  %1101 = vmatpush3.msra.mxu0 %v31_v3  ;;  %1115 = vmatprep.subr.mxu1 %v1272_v2  ;;  %v29_v7 = vld [vmem:[%s1471_s1 + $0x10] sm:$0xff]  ;;  %v28_v8 = vld [vmem:[%s1471_s1 + $0x8] sm:$0xff]  ;;  %vm40_vm2 = vcmask 343040   ;;  %vm118_vm3 = vcmask 326656  }
   0x8   :  { %1102 = vmatprep.subr.mxu0 %v1272_v2  ;;  %1116 = vmatpush3.msra.mxu1 %v1335_v5  ;;  %v27_v9 = vld [vmem:[%s1471_s1] sm:$0xff]  ;;  %s1274_s15 = smov 98   ;;  %s1276_s16 = smov 108   ;;  %vm123_vm4 = vcmask 80896   ;;  %vm1019_vm5 = vcmask 0  }
   0x9   :  { %1103 = vmatpush3.msra.mxu0 %v30_v6  ;;  %1117 = vmatprep.mubr.msk.f32.mxu1 %vm1273_vm1, %v1272_v2  ;;  %v26_v10 = vld [vmem:[%s1470_s0] sm:$0xff] }
   0xa   :  { %1104 = vmatprep.subr.mxu0 %v1272_v2  ;;  %1118 = vmatmul.mubr.f32.vlgmr.msra.gmra.mxu1 %v1272_v2  ;;  %v1035_v13 = vld [vmem:[%s1473_s3] ss:$0 sm:$0xff]  ;;  %s1275_s3 = smov 10  }
   0xb   :  { %1105 = vmatpush3.msra.mxu0 %v29_v7  ;;  %1120 = vmatprep.subr.mxu1 %v1272_v2 }
   0xc   :  { %1106 = vmatprep.subr.mxu0 %v1272_v2  ;;  %1121 = vmatpush3.msk.msra.mxu1 %vm44_vm0, %v1330_v4 }
   0xd   :  { %1107 = vmatpush3.msra.mxu0 %v28_v8  ;;  %1122 = vmatprep.subr.mxu1 %v1272_v2 }
   0xe   :  { %1108 = vmatprep.subr.mxu0 %v1272_v2  ;;  %1123 = vmatpush3.msra.mxu1 %v1335_v5 }
   0xf   :  { %1109 = vmatpush3.msra.mxu0 %v27_v9  ;;  %1124 = vmatprep.mubr.msk.f32.mxu1 %vm1273_vm1, %v1272_v2 }
  0x10   :  { %1111 = vmatmul.mubr.msk.f32.vlgmr.msra.gmra.mxu0 %vm40_vm2, %v26_v10  ;;  %1127 = vmatprep.subr.mxu1 %v1272_v2 }
  0x11   :  { %1134 = vmatprep.subr.mxu0 %v1272_v2  ;;  %1138 = vmatprep.mubr.msk.f32.mxu0 %vm1273_vm1, %v1272_v2 }
  0x12   :  { %1135 = vmatpush3.msk.msra.mxu0 %vm44_vm0, %v1330_v4 }
  0x13   :  { %1136 = vmatprep.subr.mxu0 %v1272_v2 }
  0x14   :  { %1137 = vmatpush3.msra.mxu0 %v1335_v5 }
  0x15   :  { %1148 = vmatprep.subr.mxu0 %v1272_v2 }
  0xca   :  { %v196_v11 = vpop.f32.mrf.mxu1 }
  0xcc   :  { %v1119_v12 = vpop.f32.mrf.mxu1 }
  0xd0   :  { %v114_v14 = vpop.f32.mrf.mxu0 }
  0xd1   :  { %v115_v15 = vadd.f32 %v1035_v13, %v114_v14 }
  0xd2   :  { %v1112_v16 = vpop.f32.mrf.mxu0 }
  0xd3   :  { %119 = vst.msk [vmem:[#allocation2] sm:$0xff] %vm118_vm3, %v115_v15 }
  0xda   :  { %v122_v17 = vld [vmem:[#allocation2] sm:$0x1]  ;;  %v225_v33 = vld [vmem:[#allocation2 + $0x1] sm:$0x1]  ;;  %v326_v51 = vld [vmem:[#allocation2 + $0x2] sm:$0x1] }
  0xdb   :  { %v200_v18 = vadd.f32 %v196_v11, %v122_v17  ;;  %v427_v8 = vld [vmem:[#allocation2 + $0x3] sm:$0x1] }
  0xdd   :  { %1182 = vtanh.f32 %v200_v18  ;;  %v1039_v20 = vmul.f32 -1.442695, %v200_v18 }
  0xdf   :  { %1184 = vpow2.f32 %v1039_v20 }
  0xea   :  { %v1183_v19 = vpop.eup %1182 }
  0xeb   :  { %210 = vrot.lane.b32.xlu0 %v1183_v19, %s1274_s15 }
  0xec   :  { %v1185_v21 = vpop.eup %1184 }
  0xed   :  { %v204_v22 = vadd.f32 1.0, %v1185_v21 }
  0xef   :  { %1186 = vrcp.f32 %v204_v22 }
  0xfc   :  { %v1187_v23 = vpop.eup %1186 }
  0xfd   :  { %v208_v26 = vmul.f32 0.0, %v1187_v23 }
 0x15d   :  { %v211_v24 = vpop.permute.xlu0 %210 }
 0x15e   :  { %v213_v25 = vmul.f32 %v1187_v23, %v211_v24 }
 0x160   :  { %215 = vrot.lane.b32.xlu0 %v213_v25, %s1275_s3 }
 0x1d2   :  { %v216_v27 = vpop.permute.xlu0 %215 }
 0x1d3   :  { %v218_v28 = vadd.f32 %v216_v27, %v208_v26  ;;  %v528_v26 = vld [vmem:[#allocation2 + $0x4] sm:$0x1] }
 0x1d5   :  { %1188 = vtanh.f32 %v218_v28 }
 0x1e2   :  { %v1189_v29 = vpop.eup %1188 }
 0x1e3   :  { %221 = vrot.lane.b32.xlu1 %v1189_v29, %s1275_s3 }
 0x255   :  { %v222_v30 = vpop.permute.xlu1 %221 }
 0x256   :  { %v224_v31 = vmul.f32 %v1187_v23, %v222_v30 }
 0x258   :  { %227 = vrot.lane.b32.xlu1 %v224_v31, %s1276_s16 }
 0x2ca   :  { %v228_v32 = vpop.permute.xlu1 %227 }
 0x2cb   :  { %1125 = vmatmul.mubr.msk.f32.vlgmr.msra.gmra.mxu1 %vm123_vm4, %v228_v32 }
 0x2cc   :  { %1128 = vmatpush3.msk.msra.mxu1 %vm44_vm0, %v1330_v4  ;;  %1131 = vmatprep.mubr.msk.f32.mxu1 %vm1273_vm1, %v1272_v2 }
 0x2cd   :  { %1129 = vmatprep.subr.mxu1 %v1272_v2 }
 0x2ce   :  { %1130 = vmatpush3.msra.mxu1 %v1335_v5 }
 0x2cf   :  { %1141 = vmatprep.subr.mxu1 %v1272_v2 }
 0x38b   :  { %v297_v34 = vpop.f32.mrf.mxu1 }
 0x38c   :  { %v301_v35 = vadd.f32 %v297_v34, %v225_v33 }
 0x38d   :  { %v1126_v36 = vpop.f32.mrf.mxu1 }
 0x38e   :  { %1190 = vtanh.f32 %v301_v35  ;;  %v1042_v38 = vmul.f32 -1.442695, %v301_v35 }
 0x390   :  { %1192 = vpow2.f32 %v1042_v38 }
 0x39b   :  { %v1191_v37 = vpop.eup %1190 }
 0x39c   :  { %311 = vrot.lane.b32.xlu0 %v1191_v37, %s1274_s15 }
 0x39d   :  { %v1193_v39 = vpop.eup %1192 }
 0x39e   :  { %v305_v40 = vadd.f32 1.0, %v1193_v39 }
 0x3a0   :  { %1194 = vrcp.f32 %v305_v40 }
 0x3ad   :  { %v1195_v41 = vpop.eup %1194 }
 0x3ae   :  { %v309_v44 = vmul.f32 %v1195_v41, %v218_v28 }
 0x40e   :  { %v312_v42 = vpop.permute.xlu0 %311 }
 0x40f   :  { %v314_v43 = vmul.f32 %v1195_v41, %v312_v42 }
 0x411   :  { %316 = vrot.lane.b32.xlu1 %v314_v43, %s1275_s3 }
 0x483   :  { %v317_v45 = vpop.permute.xlu1 %316 }
 0x484   :  { %v319_v46 = vadd.f32 %v317_v45, %v309_v44  ;;  %v629_v44 = vld [vmem:[#allocation2 + $0x5] sm:$0x1] }
 0x486   :  { %1196 = vtanh.f32 %v319_v46 }
 0x493   :  { %v1197_v47 = vpop.eup %1196 }
 0x494   :  { %322 = vrot.lane.b32.xlu0 %v1197_v47, %s1275_s3 }
 0x506   :  { %v323_v48 = vpop.permute.xlu0 %322 }
 0x507   :  { %v325_v49 = vmul.f32 %v1195_v41, %v323_v48 }
 0x509   :  { %328 = vrot.lane.b32.xlu1 %v325_v49, %s1276_s16 }
 0x57b   :  { %v329_v50 = vpop.permute.xlu1 %328 }
 0x57c   :  { %1132 = vmatmul.mubr.msk.f32.vlgmr.msra.gmra.mxu1 %vm123_vm4, %v329_v50 }
 0x57d   :  { %1142 = vmatpush3.msk.msra.mxu1 %vm44_vm0, %v1330_v4  ;;  %1145 = vmatprep.mubr.msk.f32.mxu1 %vm1273_vm1, %v1272_v2 }
 0x57e   :  { %1143 = vmatprep.subr.mxu1 %v1272_v2 }
 0x57f   :  { %1144 = vmatpush3.msra.mxu1 %v1335_v5 }
 0x580   :  { %1155 = vmatprep.subr.mxu1 %v1272_v2 }
 0x63c   :  { %v398_v52 = vpop.f32.mrf.mxu1 }
 0x63d   :  { %v402_v53 = vadd.f32 %v398_v52, %v326_v51 }
 0x63e   :  { %v1133_v54 = vpop.f32.mrf.mxu1 }
 0x63f   :  { %1198 = vtanh.f32 %v402_v53  ;;  %v1045_v56 = vmul.f32 -1.442695, %v402_v53 }
 0x641   :  { %1200 = vpow2.f32 %v1045_v56 }
 0x64c   :  { %v1199_v55 = vpop.eup %1198 }
 0x64d   :  { %412 = vrot.lane.b32.xlu0 %v1199_v55, %s1274_s15 }
 0x64e   :  { %v1201_v57 = vpop.eup %1200 }
 0x64f   :  { %v406_v58 = vadd.f32 1.0, %v1201_v57 }
 0x651   :  { %1202 = vrcp.f32 %v406_v58 }
 0x65e   :  { %v1203_v59 = vpop.eup %1202 }
 0x65f   :  { %v410_v62 = vmul.f32 %v1203_v59, %v319_v46 }
 0x6bf   :  { %v413_v60 = vpop.permute.xlu0 %412 }
 0x6c0   :  { %v415_v61 = vmul.f32 %v1203_v59, %v413_v60  ;;  %v730_v60 = vld [vmem:[#allocation2 + $0x6] sm:$0x1] }
 0x6c2   :  { %417 = vrot.lane.b32.xlu1 %v415_v61, %s1275_s3 }
 0x734   :  { %v418_v63 = vpop.permute.xlu1 %417 }
 0x735   :  { %v420_v0 = vadd.f32 %v418_v63, %v410_v62 }
 0x737   :  { %1204 = vtanh.f32 %v420_v0 }
 0x744   :  { %v1205_v1 = vpop.eup %1204 }
 0x745   :  { %423 = vrot.lane.b32.xlu0 %v1205_v1, %s1275_s3 }
 0x7b7   :  { %v424_v3 = vpop.permute.xlu0 %423 }
 0x7b8   :  { %v426_v6 = vmul.f32 %v1203_v59, %v424_v3 }
 0x7ba   :  { %429 = vrot.lane.b32.xlu1 %v426_v6, %s1276_s16 }
 0x82c   :  { %v430_v7 = vpop.permute.xlu1 %429 }
 0x82d   :  { %1139 = vmatmul.mubr.msk.f32.vlgmr.msra.gmra.mxu0 %vm123_vm4, %v430_v7 }
 0x82e   :  { %1149 = vmatpush3.msk.msra.mxu0 %vm44_vm0, %v1330_v4  ;;  %1152 = vmatprep.mubr.msk.f32.mxu0 %vm1273_vm1, %v1272_v2 }
 0x82f   :  { %1150 = vmatprep.subr.mxu0 %v1272_v2 }
 0x830   :  { %1151 = vmatpush3.msra.mxu0 %v1335_v5 }
 0x831   :  { %1162 = vmatprep.subr.mxu0 %v1272_v2 }
 0x8ed   :  { %v499_v9 = vpop.f32.mrf.mxu0 }
 0x8ee   :  { %v503_v10 = vadd.f32 %v499_v9, %v427_v8 }
 0x8ef   :  { %v1140_v11 = vpop.f32.mrf.mxu0 }
 0x8f0   :  { %1206 = vtanh.f32 %v503_v10  ;;  %v1048_v13 = vmul.f32 -1.442695, %v503_v10 }
 0x8f2   :  { %1208 = vpow2.f32 %v1048_v13 }
 0x8fd   :  { %v1207_v12 = vpop.eup %1206 }
 0x8fe   :  { %513 = vrot.lane.b32.xlu0 %v1207_v12, %s1274_s15 }
 0x8ff   :  { %v1209_v14 = vpop.eup %1208 }
 0x900   :  { %v507_v15 = vadd.f32 1.0, %v1209_v14 }
 0x902   :  { %1210 = vrcp.f32 %v507_v15 }
 0x90f   :  { %v1211_v16 = vpop.eup %1210 }
 0x910   :  { %v511_v19 = vmul.f32 %v1211_v16, %v420_v0 }
 0x970   :  { %v514_v17 = vpop.permute.xlu0 %513 }
 0x971   :  { %v516_v18 = vmul.f32 %v1211_v16, %v514_v17  ;;  %v831_v17 = vld [vmem:[#allocation2 + $0x7] sm:$0x1] }
 0x973   :  { %518 = vrot.lane.b32.xlu1 %v516_v18, %s1275_s3 }
 0x9e5   :  { %v519_v20 = vpop.permute.xlu1 %518 }
 0x9e6   :  { %v521_v21 = vadd.f32 %v519_v20, %v511_v19 }
 0x9e8   :  { %1212 = vtanh.f32 %v521_v21 }
 0x9f5   :  { %v1213_v22 = vpop.eup %1212 }
 0x9f6   :  { %524 = vrot.lane.b32.xlu0 %v1213_v22, %s1275_s3 }
 0xa68   :  { %v525_v23 = vpop.permute.xlu0 %524 }
 0xa69   :  { %v527_v24 = vmul.f32 %v1211_v16, %v525_v23 }
 0xa6b   :  { %530 = vrot.lane.b32.xlu1 %v527_v24, %s1276_s16 }
 0xadd   :  { %v531_v25 = vpop.permute.xlu1 %530 }
 0xade   :  { %1146 = vmatmul.mubr.msk.f32.vlgmr.msra.gmra.mxu1 %vm123_vm4, %v531_v25 }
 0xadf   :  { %1156 = vmatpush3.msk.msra.mxu1 %vm44_vm0, %v1330_v4  ;;  %1159 = vmatprep.mubr.msk.f32.mxu1 %vm1273_vm1, %v1272_v2 }
 0xae0   :  { %1157 = vmatprep.subr.mxu1 %v1272_v2 }
 0xae1   :  { %1158 = vmatpush3.msra.mxu1 %v1335_v5 }
 0xae2   :  { %1169 = vmatprep.subr.mxu1 %v1272_v2 }
 0xb9e   :  { %v600_v27 = vpop.f32.mrf.mxu1 }
 0xb9f   :  { %v604_v28 = vadd.f32 %v600_v27, %v528_v26 }
 0xba0   :  { %v1147_v29 = vpop.f32.mrf.mxu1 }
 0xba1   :  { %1214 = vtanh.f32 %v604_v28  ;;  %v1051_v31 = vmul.f32 -1.442695, %v604_v28 }
 0xba3   :  { %1216 = vpow2.f32 %v1051_v31  ;;  %v933_v31 = vld [vmem:[%s1474_s4 + $0x8] sm:$0x3] }
 0xbae   :  { %v1215_v30 = vpop.eup %1214 }
 0xbaf   :  { %614 = vrot.lane.b32.xlu0 %v1215_v30, %s1274_s15 }
 0xbb0   :  { %v1217_v32 = vpop.eup %1216 }
 0xbb1   :  { %v608_v33 = vadd.f32 1.0, %v1217_v32  ;;  %v932_v32 = vld [vmem:[%s1474_s4] sm:$0xff]  ;;  %s1277_s4 = smov [#allocation4]  }
 0xbb2   :  { %s1027_s21 = sshll.u32 %s1277_s4, 4  ;;  %s1028_s21 = int_to_ptr.vmem [resolvable:$true] %s1027_s21 }
 0xbb3   :  { %1218 = vrcp.f32 %v608_v33  ;;  %s1250_s22 = scalar_lea.vmem %s1028_s21, 16  ;;  %s1254_s23 = scalar_lea.vmem %s1028_s21, 32 }
 0xbb4   :  { %p1251_p0 = scmp.ne.s32.totalorder %s1028_s21, %s1250_s22  ;;  %p1255_p1 = scmp.lt.s32.totalorder %s1028_s21, %s1028_s21 }
 0xbb5   :  { %p1256_p2 = scmp.lt.s32.totalorder %s1254_s23, %s1250_s22 }
 0xbb7   :  { %p1257_p3 = por %p1256_p2, %p1255_p1 }
 0xbb9   :  { %p1258_p4 = pnand %p1257_p3, %p1251_p0 }
 0xbc0   :  { %v1219_v34 = vpop.eup %1218 }
 0xbc1   :  { %v612_v37 = vmul.f32 %v1219_v34, %v521_v21 }
 0xc21   :  { %v615_v35 = vpop.permute.xlu0 %614 }
 0xc22   :  { %v617_v36 = vmul.f32 %v1219_v34, %v615_v35 }
 0xc24   :  { %619 = vrot.lane.b32.xlu1 %v617_v36, %s1275_s3 }
 0xc96   :  { %v620_v38 = vpop.permute.xlu1 %619 }
 0xc97   :  { %v622_v39 = vadd.f32 %v620_v38, %v612_v37  ;;  %v934_v37 = vld [vmem:[#allocation3] sm:$0x1] }
 0xc99   :  { %1220 = vtanh.f32 %v622_v39 }
 0xca6   :  { %v1221_v40 = vpop.eup %1220 }
 0xca7   :  { %625 = vrot.lane.b32.xlu0 %v1221_v40, %s1275_s3 }
 0xd19   :  { %v626_v41 = vpop.permute.xlu0 %625 }
 0xd1a   :  { %v628_v42 = vmul.f32 %v1219_v34, %v626_v41 }
 0xd1c   :  { %631 = vrot.lane.b32.xlu1 %v628_v42, %s1276_s16 }
 0xd8e   :  { %v632_v43 = vpop.permute.xlu1 %631 }
 0xd8f   :  { %1153 = vmatmul.mubr.msk.f32.vlgmr.msra.gmra.mxu0 %vm123_vm4, %v632_v43 }
 0xd90   :  { %1163 = vmatpush3.msk.msra.mxu0 %vm44_vm0, %v1330_v4  ;;  %1166 = vmatprep.mubr.msk.f32.mxu0 %vm1273_vm1, %v1272_v2 }
 0xd91   :  { %1164 = vmatprep.subr.mxu0 %v1272_v2 }
 0xd92   :  { %1165 = vmatpush3.msra.mxu0 %v1335_v5 }
 0xe4f   :  { %v701_v45 = vpop.f32.mrf.mxu0 }
 0xe50   :  { %v705_v46 = vadd.f32 %v701_v45, %v629_v44 }
 0xe51   :  { %v1154_v47 = vpop.f32.mrf.mxu0 }
 0xe52   :  { %1222 = vtanh.f32 %v705_v46  ;;  %v1054_v49 = vmul.f32 -1.442695, %v705_v46 }
 0xe54   :  { %1224 = vpow2.f32 %v1054_v49 }
 0xe5f   :  { %v1223_v48 = vpop.eup %1222 }
 0xe60   :  { %715 = vrot.lane.b32.xlu0 %v1223_v48, %s1274_s15 }
 0xe61   :  { %v1225_v50 = vpop.eup %1224 }
 0xe62   :  { %v709_v51 = vadd.f32 1.0, %v1225_v50 }
 0xe64   :  { %1226 = vrcp.f32 %v709_v51 }
 0xe71   :  { %v1227_v4 = vpop.eup %1226 }
 0xe72   :  { %v713_v54 = vmul.f32 %v1227_v4, %v622_v39 }
 0xed2   :  { %v716_v52 = vpop.permute.xlu0 %715 }
 0xed3   :  { %v718_v53 = vmul.f32 %v1227_v4, %v716_v52 }
 0xed5   :  { %720 = vrot.lane.b32.xlu1 %v718_v53, %s1275_s3 }
 0xf47   :  { %v721_v5 = vpop.permute.xlu1 %720 }
 0xf48   :  { %v723_v55 = vadd.f32 %v721_v5, %v713_v54 }
 0xf4a   :  { %1228 = vtanh.f32 %v723_v55 }
 0xf57   :  { %v1229_v56 = vpop.eup %1228 }
 0xf58   :  { %726 = vrot.lane.b32.xlu0 %v1229_v56, %s1275_s3 }
 0xfca   :  { %v727_v57 = vpop.permute.xlu0 %726 }
 0xfcb   :  { %v729_v58 = vmul.f32 %v1227_v4, %v727_v57 }
 0xfcd   :  { %732 = vrot.lane.b32.xlu1 %v729_v58, %s1276_s16 }
0x103f   :  { %v733_v59 = vpop.permute.xlu1 %732 }
0x1040   :  { %1160 = vmatmul.mubr.msk.f32.vlgmr.msra.gmra.mxu1 %vm123_vm4, %v733_v59 }
0x1041   :  { %1173 = vmatprep.mubr.msk.f32.mxu1 %vm1273_vm1, %v1272_v2  ;;  %1170 = vmatpush3.msk.msra.mxu1 %vm44_vm0, %v933_v31 }
0x1042   :  { %1171 = vmatprep.subr.mxu1 %v1272_v2 }
0x1043   :  { %1172 = vmatpush3.msra.mxu1 %v932_v32 }
0x1100   :  { %v802_v61 = vpop.f32.mrf.mxu1 }
0x1101   :  { %v806_v62 = vadd.f32 %v802_v61, %v730_v60 }
0x1102   :  { %v1161_v63 = vpop.f32.mrf.mxu1 }
0x1103   :  { %1230 = vtanh.f32 %v806_v62  ;;  %v1057_v1 = vmul.f32 -1.442695, %v806_v62 }
0x1105   :  { %1232 = vpow2.f32 %v1057_v1 }
0x1110   :  { %v1231_v0 = vpop.eup %1230 }
0x1111   :  { %816 = vrot.lane.b32.xlu0 %v1231_v0, %s1274_s15 }
0x1112   :  { %v1233_v3 = vpop.eup %1232 }
0x1113   :  { %v810_v6 = vadd.f32 1.0, %v1233_v3 }
0x1115   :  { %1234 = vrcp.f32 %v810_v6 }
0x1122   :  { %v1235_v7 = vpop.eup %1234 }
0x1123   :  { %v814_v10 = vmul.f32 %v1235_v7, %v723_v55 }
0x1183   :  { %v817_v8 = vpop.permute.xlu0 %816 }
0x1184   :  { %v819_v9 = vmul.f32 %v1235_v7, %v817_v8 }
0x1186   :  { %821 = vrot.lane.b32.xlu1 %v819_v9, %s1275_s3 }
0x11f8   :  { %v822_v11 = vpop.permute.xlu1 %821 }
0x11f9   :  { %v824_v12 = vadd.f32 %v822_v11, %v814_v10 }
0x11fb   :  { %1236 = vtanh.f32 %v824_v12 }
0x1208   :  { %v1237_v13 = vpop.eup %1236 }
0x1209   :  { %827 = vrot.lane.b32.xlu0 %v1237_v13, %s1275_s3 }
0x127b   :  { %v828_v14 = vpop.permute.xlu0 %827 }
0x127c   :  { %v830_v15 = vmul.f32 %v1235_v7, %v828_v14 }
0x127e   :  { %833 = vrot.lane.b32.xlu1 %v830_v15, %s1276_s16 }
0x12f0   :  { %v834_v16 = vpop.permute.xlu1 %833 }
0x12f1   :  { %1167 = vmatmul.mubr.msk.f32.vlgmr.msra.gmra.mxu0 %vm123_vm4, %v834_v16 }
0x13b1   :  { %v903_v18 = vpop.f32.mrf.mxu0 }
0x13b2   :  { %v907_v19 = vadd.f32 %v903_v18, %v831_v17 }
0x13b3   :  { %v1168_v20 = vpop.f32.mrf.mxu0 }
0x13b4   :  { %1238 = vtanh.f32 %v907_v19  ;;  %v1060_v22 = vmul.f32 -1.442695, %v907_v19 }
0x13b6   :  { %1240 = vpow2.f32 %v1060_v22 }
0x13c1   :  { %v1239_v21 = vpop.eup %1238 }
0x13c2   :  { %917 = vrot.lane.b32.xlu0 %v1239_v21, %s1274_s15 }
0x13c3   :  { %v1241_v23 = vpop.eup %1240 }
0x13c4   :  { %v911_v24 = vadd.f32 1.0, %v1241_v23 }
0x13c6   :  { %1242 = vrcp.f32 %v911_v24 }
0x13d3   :  { %v1243_v25 = vpop.eup %1242 }
0x13d4   :  { %v915_v28 = vmul.f32 %v1243_v25, %v824_v12 }
0x1434   :  { %v918_v26 = vpop.permute.xlu0 %917 }
0x1435   :  { %v920_v27 = vmul.f32 %v1243_v25, %v918_v26 }
0x1437   :  { %922 = vrot.lane.b32.xlu1 %v920_v27, %s1275_s3 }
0x14a9   :  { %v923_v29 = vpop.permute.xlu1 %922 }
0x14aa   :  { %v925_v30 = vadd.f32 %v923_v29, %v915_v28 }
0x14ac   :  { %1244 = vtanh.f32 %v925_v30 }
0x14b9   :  { %v1245_v33 = vpop.eup %1244 }
0x14ba   :  { %928 = vrot.lane.b32.xlu0 %v1245_v33, %s1275_s3 }
0x152c   :  { %v929_v34 = vpop.permute.xlu0 %928 }
0x152d   :  { %v931_v35 = vmul.f32 %v1243_v25, %v929_v34 }
0x152f   :  { %936 = vrot.lane.b32.xlu1 %v931_v35, %s1276_s16 }
0x15a1   :  { %v937_v36 = vpop.permute.xlu1 %936 }
0x15a2   :  { %1174 = vmatmul.mubr.msk.f32.vlgmr.msra.gmra.mxu1 %vm123_vm4, %v937_v36 }
0x1662   :  { %v1009_v38 = vpop.f32.mrf.mxu1 }
0x1663   :  { %v1010_v39 = vadd.f32 %v1009_v38, %v934_v37 }
0x1664   :  { %v1175_v40 = vpop.f32.mrf.mxu1 }
0x1665   :  { %v1063_v41 = vmul.f32 -1.442695, %v1010_v39 }
0x1667   :  { %1246 = vpow2.f32 %v1063_v41 }
0x1674   :  { %v1247_v42 = vpop.eup %1246 }
0x1675   :  { %v1016_v43 = vadd.f32 1.0, %v1247_v42 }
0x1677   :  { %1248 = vrcp.f32 %v1016_v43 }
0x1684   :  { %v1249_v2 = vpop.eup %1248 }
0x1685   :  { %1020 = vst.msk [vmem:[#allocation4] sm:$0x1] %vm1019_vm5, %v1249_v2 }
0x1686   :  { %1261 = shalt.err (!%p1258_p4)
}
0x1687   :  { %1030 = dma.vmem_to_hbm [thread:$0]  %s1028_s21, 16, %s1476_s6, [#allocation5]  }
0x1688   :  { %1270 = dma.done.wait [#allocation5], 16  }
0x1689   :  { %1271 = vsyncadd [#allocation5], 4294967280 }
0x168a   :  { %1034 = vsyncpa [#allocation5], 1 }

</bundles_post_ra>
